<compile_context>
chip_gen: v7x
topology: tpu7x:2x2x1
jax: 0.10.0
libtpu: 0.0.40
codegen_flags: <defaults>
</compile_context>

<pallas_src>
import numpy as np
import jax
import jax.numpy as jnp
from jax import lax
from jax.experimental import pallas as pl
from jax.experimental.pallas import tpu as pltpu  # noqa: F401


def _build_anchor_kernel(level_widths, level_strides, num_anchors):
    """Kernel writing the packed (sum_l W_l, 2A) anchor table.

    For level l, local grid cell w, column (a*2 + c):
        out[off_l + w, a*2 + c] = w * stride_l + base_l[a, c]
    widths / strides are compile-time constants; base anchors arrive as a
    small (L, 2A) f32 VMEM input.
    """
    two_a = 2 * num_anchors

    def kernel(bases_ref, out_ref):
        bases = bases_ref[...].astype(jnp.float32)                 # (L, 2A)
        off = 0
        for l, (w, stride) in enumerate(zip(level_widths, level_strides)):
            base_row = lax.slice_in_dim(bases, l, l + 1, axis=0)   # (1, 2A)
            w_idx = lax.broadcasted_iota(jnp.int32, (w, two_a), 0)
            shift = (w_idx * np.int32(stride)).astype(jnp.float32)  # (W, 2A)
            vals = shift + base_row                                  # outer sum
            # compute in f32, cast to the feature-map dtype only at the store
            out_ref[pl.ds(off, w), :] = vals.astype(out_ref.dtype)
            off += w

    return kernel


class BoundaryAnchorGeneratorPallas:
    """JAX/Pallas port of deepmrm.model.utils.BoundaryAnchorGenerator."""

    def __init__(self, sizes):
        num_anchors = [len(s) for s in sizes]
        if any(n != num_anchors[0] for n in num_anchors):
            raise ValueError(
                "Number of anchors per location at every level should be the same")
        self.sizes = tuple(tuple(float(x) for x in s) for s in sizes)
        self.cell_anchors = [self.generate_anchors(s) for s in self.sizes]
        # (L, 2A): level-major, then anchor-major, then (start, end)
        self._bases_flat = np.stack(
            [b.reshape(-1) for b in self.cell_anchors], axis=0).astype(np.float32)
        self._cache = {}   # (image_width, widths, dtype) -> materialized anchors

    @staticmethod
    def generate_anchors(scales, dtype=np.float32):
        ws = np.asarray(scales, dtype=dtype)
        base = np.stack([-ws, ws], axis=1) / 2.0
        # np.round is round-half-to-even, same as torch.round
        return np.round(base).astype(dtype)

    def num_anchors_per_location(self):
        return len(self.sizes[0])

    def _materialize(self, image_width, widths, dtype):
        a_per_loc = self.num_anchors_per_location()
        strides = []
        for w in widths:
            stride = image_width // w
            # f32 integer math in the kernel is exact only below 2**24
            assert w * stride < 2 ** 24, "anchor coords exceed f32 exact-int range"
            strides.append(int(stride))
        sum_w = sum(widths)

        kernel = _build_anchor_kernel(tuple(widths), tuple(strides), a_per_loc)
        call = pl.pallas_call(
            kernel,
            out_shape=jax.ShapeDtypeStruct((sum_w, 2 * a_per_loc), dtype),
        )

        @jax.jit
        def run(bases):
            packed = call(bases)                       # (sum_W, 2A), lane-dense rows
            # row-major reshape: (level-concat W, A, 2) -> (sum_W * A, 2)
            return packed.reshape(sum_w * a_per_loc, 2)

        # NOTE: like torch (which adds int shifts to dtype-cast base anchors),
        # the result is in the feature-map dtype; we accumulate in f32 and
        # round once at the store.
        anchors = run(jnp.asarray(self._bases_flat, dtype=jnp.float32))
        return jax.block_until_ready(anchors)

    def __call__(self, input_image_shape, feature_maps):
        if len(self.cell_anchors) != len(feature_maps):
            raise ValueError(
                "There needs to be a match between the number of feature maps "
                "passed and the number of sizes specified.")
        dtype = feature_maps[0].dtype
        widths = tuple(int(fm.shape[-1]) for fm in feature_maps)
        image_width = int(input_image_shape[-1])
        key = (image_width, widths, jnp.dtype(dtype).name)
        anchors = self._cache.get(key)
        if anchors is None:
            anchors = self._materialize(image_width, widths, dtype)
            self._cache[key] = anchors          # cache the ARRAY, not a callable
        # One copy of the anchor set per image in the batch.
        return [anchors for _ in range(int(input_image_shape[0]))]


def _reference_numpy(sizes, input_image_shape, feature_maps):
    """Pure-numpy mirror of the torch forward for validation."""
    image_width = input_image_shape[-1]
    pieces = []
    for s, fm in zip(sizes, feature_maps):
        ws = np.asarray(s, dtype=np.float32)
        base = np.round(np.stack([-ws, ws], axis=1) / 2.0)           # (A, 2)
        w = fm.shape[-1]
        stride = image_width // w
        shifts_x = np.arange(0, w, dtype=np.int64) * stride
        shifts = np.stack((shifts_x, shifts_x), axis=1)              # (W, 2)
        anchors = (shifts.reshape(-1, 1, 2) + base.reshape(1, -1, 2)).reshape(-1, 2)
        pieces.append(anchors.astype(np.float32))
    cat = np.concatenate(pieces, axis=0)
    return [cat for _ in range(input_image_shape[0])]


if __name__ == "__main__":
    key = jax.random.PRNGKey(0)
    k1, k2 = jax.random.split(key)

    # Two pyramid levels, three anchor widths per location.
    sizes = ((8, 16, 32), (16, 32, 64))

    # input image: batch=2, channels=1, width=256  -> strides 16 and 32
    input_image_shape = (2, 1, 256)
    feature_maps = [
        jax.random.normal(k1, (2, 4, 16), dtype=jnp.float32),  # NCW, width 16
        jax.random.normal(k2, (2, 4, 8), dtype=jnp.float32),   # NCW, width 8
    ]

    gen = BoundaryAnchorGeneratorPallas(sizes)
    anchors = gen(input_image_shape, feature_maps)
    anchors = [jax.block_until_ready(a) for a in anchors]

    # Call again with the same signature: must hit the materialized-array cache
    # (no re-dispatch of the kernel).
    anchors2 = gen(input_image_shape, feature_maps)
    anchors2 = [jax.block_until_ready(a) for a in anchors2]
    assert anchors2[0] is anchors[0], "cache of materialized anchors not hit"

    ref = _reference_numpy(sizes, input_image_shape,
                           [np.asarray(fm) for fm in feature_maps])
    assert len(anchors) == len(ref)
    for got, exp in zip(anchors, ref):
        assert got.shape == exp.shape, (got.shape, exp.shape)
        np.testing.assert_allclose(np.asarray(got), exp, rtol=0, atol=0)
    for got, exp in zip(anchors2, ref):
        np.testing.assert_allclose(np.asarray(got), exp, rtol=0, atol=0)

    print("KERNEL_OK")
</pallas_src>

<mosaic_0001>
module attributes {stable_mosaic.version = 11 : i64} {
  func.func @kernel(%arg0: memref<2x6xf32, #tpu.memory_space<vmem>>, %arg1: memref<24x6xf32, #tpu.memory_space<vmem>>) attributes {dimension_semantics = [], scalar_prefetch = 0 : i64, scratch_operands = 0 : i64, tpu.core_type = #tpu.core_type<tc>} {
    %c0 = arith.constant 0 : index
    %c0_0 = arith.constant 0 : index
    %0 = vector.load %arg0[%c0, %c0_0] : memref<2x6xf32, #tpu.memory_space<vmem>>, vector<2x6xf32>
    %1 = vector.extract_strided_slice %0 {offsets = [0, 0], sizes = [1, 6], strides = [1, 1]} : vector<2x6xf32> to vector<1x6xf32>
    %2 = tpu.iota {dimensions = array<i32: 0>} : vector<16x6xi32>
    %c16_i32 = arith.constant 16 : i32
    %3 = vector.broadcast %c16_i32 : i32 to vector<16x6xi32>
    %4 = arith.muli %2, %3 : vector<16x6xi32>
    %5 = arith.sitofp %4 : vector<16x6xi32> to vector<16x6xf32>
    %6 = vector.broadcast %1 : vector<1x6xf32> to vector<16x6xf32>
    %7 = arith.addf %5, %6 : vector<16x6xf32>
    %c0_1 = arith.constant 0 : index
    %c0_2 = arith.constant 0 : index
    %8 = vector.load %arg1[%c0_1, %c0_2] : memref<24x6xf32, #tpu.memory_space<vmem>>, vector<16x6xf32>
    tpu.vector_store %arg1[%c0_1, %c0_2], %7 {strides = array<i32>} : memref<24x6xf32, #tpu.memory_space<vmem>>, vector<16x6xf32>,
    %9 = vector.extract_strided_slice %0 {offsets = [1, 0], sizes = [1, 6], strides = [1, 1]} : vector<2x6xf32> to vector<1x6xf32>
    %10 = tpu.iota {dimensions = array<i32: 0>} : vector<8x6xi32>
    %c32_i32 = arith.constant 32 : i32
    %11 = vector.broadcast %c32_i32 : i32 to vector<8x6xi32>
    %12 = arith.muli %10, %11 : vector<8x6xi32>
    %13 = arith.sitofp %12 : vector<8x6xi32> to vector<8x6xf32>
    %14 = vector.broadcast %9 : vector<1x6xf32> to vector<8x6xf32>
    %15 = arith.addf %13, %14 : vector<8x6xf32>
    %c16 = arith.constant 16 : index
    %c0_3 = arith.constant 0 : index
    %16 = vector.load %arg1[%c16, %c0_3] : memref<24x6xf32, #tpu.memory_space<vmem>>, vector<8x6xf32>
    tpu.vector_store %arg1[%c16, %c0_3], %15 {strides = array<i32>} : memref<24x6xf32, #tpu.memory_space<vmem>>, vector<8x6xf32>,
    return
  }
}

</mosaic_0001>

<bundles_post_ra>
// kernel: run.1
= control target key start
LH: loop header
LB: loop body
LE: loop exit
PB: predicated region body
PF: predicated region fallthrough
CT: control target
= control target key end

     0   :  { %6 = vsyncpa [#allocation3], 0  ;;  %s75_s6 = smov [#allocation2]   ;;  %s107_s0 = inlined_call_operand.hbm [shape: f32[2,6], index: 0, kind: input, shape index: {}]   ;;  %s108_s1 = inlined_call_operand.vmem [shape: f32[24,6], index: 1, kind: output, shape index: {}]  }
   0x1   :  { %s13_s7 = sshll.u32 %s75_s6, 4  ;;  %s51_s10 = scalar_lea.hbm %s107_s0, 32  ;;  %s14_s7 = int_to_ptr.vmem [resolvable:$true] %s13_s7 }
   0x2   :  { %p52_p0 = scmp.ne.s32.totalorder %s107_s0, %s51_s10  ;;  %p55_p1 = scmp.lt.u32.totalorder %s51_s10, %s107_s0 }
   0x4   :  { %p57_p2 = pnand %p55_p1, %p52_p0 }
   0x6   :  { %60 = shalt.err (!%p57_p2)
}
   0x7   :  { %s61_s15 = scalar_lea.vmem %s14_s7, 32  ;;  %p66_p4 = scmp.lt.s32.totalorder %s14_s7, %s14_s7 }
   0x8   :  { %p62_p3 = scmp.ne.s32.totalorder %s14_s7, %s61_s15  ;;  %p67_p5 = scmp.lt.s32.totalorder %s61_s15, %s61_s15 }
   0xa   :  { %p68_p6 = por %p67_p5, %p66_p4 }
   0xc   :  { %p69_p7 = pnand %p68_p6, %p62_p3 }
   0xe   :  { %72 = shalt.err (!%p69_p7)
}
   0xf   :  { %16 = dma.hbm_to_vmem [thread:$0]  %s107_s0, 32, %s14_s7, [#allocation3]  }
  0x10   :  { %73 = dma.done.wait [#allocation3], 32  }
  0x11   :  { %74 = vsyncadd [#allocation3], 4294967264  ;;  %v21_v0 = vlaneseq  ;;  %v20_v10 = vld [vmem:[#allocation2] sm:$0x3]  ;;  %vm34_vm0 = vcmask 48128  }
  0x13   :  { %v22_v1 = vshrl.u32 %v21_v0, 7 }
  0x15   :  { %v24_v2 = vmul.u32 16, %v22_v1  ;;  %v30_v3 = vsub.s32 0, %v22_v1  ;;  %v23_v4 = vadd.s32 8, %v22_v1  ;;  %v37_v5 = vmul.u32 32, %v22_v1 }
  0x16   :  { %v41_v6 = vsub.s32 1, %v22_v1 }
  0x17   :  { %v26_v7 = vcvt.s32.f32 %v24_v2  ;;  %v25_v8 = vmul.u32 16, %v23_v4  ;;  %v38_v9 = vcvt.s32.f32 %v37_v5  ;;  %v31_v11 = vrot.slane %v20_v10, %v30_v3 }
  0x18   :  { %v42_v13 = vrot.slane %v20_v10, %v41_v6 }
  0x19   :  { %v27_v12 = vcvt.s32.f32 %v25_v8  ;;  %v32_v14 = vadd.f32 %v31_v11, %v26_v7 }
  0x1a   :  { %v43_v16 = vadd.f32 %v42_v13, %v38_v9 }
  0x1b   :  { %v33_v15 = vadd.f32 %v31_v11, %v27_v12  ;;  %35 = vst.msk [vmem:[%s108_s1] sm:$0xff] %vm34_vm0, %v32_v14 }
  0x1c   :  { %44 = vst.msk [vmem:[%s108_s1 + $0x10] sm:$0xff] %vm34_vm0, %v43_v16 }
  0x1d   :  { %36 = vst.msk [vmem:[%s108_s1 + $0x8] sm:$0xff] %vm34_vm0, %v33_v15 }
  0x1e   :  { %49 = vsyncpa [#allocation3], 1 }

</bundles_post_ra>
